<compile_context>
chip_gen: v7x
topology: tpu7x:2x2x1
jax: 0.10.0
libtpu: 0.0.40
codegen_flags: <defaults>
</compile_context>

<pallas_src>
import functools

import jax
import jax.numpy as jnp
from jax.experimental import pallas as pl
from jax.experimental.pallas import tpu as pltpu

_LANES = 128


def _dice_sums_kernel(pred_ref, label_ref, inter_ref, psum_ref, lsum_ref, *,
                      rows_valid, rows_per_tile, n_inner, mask_rows):
    """Accumulates per-batch lane-wide partial sums for one (B, RT, 128) tile."""
    c = pl.program_id(0)          # parallel chunk (megacore)
    j = pl.program_id(1)          # reduction step within chunk

    @pl.when(j == 0)
    def _():
        inter_ref[...] = jnp.zeros_like(inter_ref)
        psum_ref[...] = jnp.zeros_like(psum_ref)
        lsum_ref[...] = jnp.zeros_like(lsum_ref)

    p = pred_ref[...].astype(jnp.float32)     # (B, RT, 128) upcast on the VPU
    l = label_ref[...].astype(jnp.float32)

    if mask_rows:  # static: only emitted when the row tiling overflows R
        row0 = (c * n_inner + j) * rows_per_tile
        row = row0 + jax.lax.broadcasted_iota(jnp.int32, p.shape, dimension=1)
        valid = row < rows_valid
        p = jnp.where(valid, p, 0.0)
        l = jnp.where(valid, l, 0.0)

    # Reduce only over the sublane (row) axis; keep 128-wide lane partials.
    inter_ref[...] += jnp.sum(p * l, axis=1)[None]
    psum_ref[...] += jnp.sum(p, axis=1)[None]
    lsum_ref[...] += jnp.sum(l, axis=1)[None]


def _pick_rows_per_tile(batch, rows, itemsize):
    """Largest lane-dense row tile that keeps double-buffered inputs in VMEM."""
    bytes_per_row = batch * _LANES * itemsize          # one (B, 1, 128) slab
    target = 2 * 1024 * 1024                           # ~2 MiB per input block
    budget = 12 * 1024 * 1024                          # 2 inputs x 2 buffers
    rt = max(8, target // bytes_per_row)
    rt = min(rt, max(8, budget // (4 * bytes_per_row)))
    rt = max(8, (rt // 8) * 8)                         # multiple of 8 sublanes
    if rows <= rt:
        return int(rows)                               # full extent is allowed
    return int(rt)


def binary_dice_loss(pred, label, *, smooth=100.0):
    """Pallas implementation of BinaryDiceLoss.forward (returns scalar f32)."""
    assert pred.shape == label.shape
    b = pred.shape[0]

    pred_flat = pred.reshape(b, -1)        # native dtype, free reshape
    label_flat = label.reshape(b, -1)
    n = pred_flat.shape[1]

    rem = n % _LANES
    if rem:
        # TODO(synk): an in-kernel lane-tail mask would avoid this copy; only
        # hit when C*H*W is not a multiple of 128.
        pad = ((0, 0), (0, _LANES - rem))
        pred_flat = jnp.pad(pred_flat, pad)
        label_flat = jnp.pad(label_flat, pad)

    rows = pred_flat.shape[1] // _LANES
    pred3 = pred_flat.reshape(b, rows, _LANES)     # contiguous -> free reshape
    label3 = label_flat.reshape(b, rows, _LANES)

    itemsize = max(jnp.dtype(pred3.dtype).itemsize,
                   jnp.dtype(label3.dtype).itemsize)
    rt = _pick_rows_per_tile(b, rows, itemsize)
    n_row_tiles = pl.cdiv(rows, rt)
    n_chunks = 2 if n_row_tiles >= 4 else 1        # v7x: both TCs share work
    n_inner = pl.cdiv(n_row_tiles, n_chunks)
    mask_rows = (n_chunks * n_inner * rt) != rows

    def in_map(c, j):
        # Clamp so a fully-overflowing tail tile re-reads the last valid block
        # (its contribution is zeroed by the in-kernel row mask).
        return (0, jnp.minimum(c * n_inner + j, n_row_tiles - 1), 0)

    def out_map(c, j):
        return (c, 0, 0)

    kernel = functools.partial(
        _dice_sums_kernel, rows_valid=rows, rows_per_tile=rt,
        n_inner=n_inner, mask_rows=mask_rows)

    part_shape = jax.ShapeDtypeStruct((n_chunks, b, _LANES), jnp.float32)

    inter_p, psum_p, lsum_p = pl.pallas_call(
        kernel,
        out_shape=(part_shape, part_shape, part_shape),
        grid_spec=pltpu.PrefetchScalarGridSpec(
            num_scalar_prefetch=0,
            grid=(n_chunks, n_inner),
            in_specs=[
                pl.BlockSpec((b, rt, _LANES), in_map),
                pl.BlockSpec((b, rt, _LANES), in_map),
            ],
            out_specs=[
                pl.BlockSpec((1, b, _LANES), out_map),
                pl.BlockSpec((1, b, _LANES), out_map),
                pl.BlockSpec((1, b, _LANES), out_map),
            ],
        ),
        compiler_params=pltpu.CompilerParams(
            dimension_semantics=("parallel", "arbitrary"),
            vmem_limit_bytes=32 * 1024 * 1024),
    )(pred3, label3)

    # Tiny epilogue: collapse chunk + lane partials, then the dice formula.
    inter = jnp.sum(inter_p, axis=(0, 2))          # (B,)
    psum = jnp.sum(psum_p, axis=(0, 2))
    lsum = jnp.sum(lsum_p, axis=(0, 2))
    dice = (2.0 * inter + smooth) / (psum + lsum + smooth)
    return 1.0 - jnp.sum(dice) / b


def _reference(pred, label, smooth=100.0):
    b = pred.shape[0]
    p = pred.reshape(b, -1).astype(jnp.float32)
    l = label.reshape(b, -1).astype(jnp.float32)
    inter = jnp.sum(p * l, axis=1)
    dice = (2.0 * inter + smooth) / (jnp.sum(p, axis=1) + jnp.sum(l, axis=1) + smooth)
    return 1.0 - jnp.sum(dice) / b


if __name__ == "__main__":
    key = jax.random.PRNGKey(0)
    k1, k2 = jax.random.split(key)

    B, C, H, W = 2, 4, 16, 16
    pred = jax.nn.sigmoid(jax.random.normal(k1, (B, C, H, W), jnp.float32))
    label = (jax.random.uniform(k2, (B, C, H, W)) > 0.5).astype(jnp.float32)

    loss = binary_dice_loss(pred, label)
    loss = jax.block_until_ready(loss)

    ref = _reference(pred, label)
    assert jnp.allclose(loss, ref, atol=1e-5, rtol=1e-5), (loss, ref)

    print("KERNEL_OK")
</pallas_src>

<mosaic_0001>
module attributes {stable_mosaic.version = 11 : i64} {
  func.func @_dice_sums_kernel(%arg0: i32, %arg1: i32, %arg2: memref<2x8x128xf32, #tpu.memory_space<vmem>>, %arg3: memref<2x8x128xf32, #tpu.memory_space<vmem>>, %arg4: memref<1x2x128xf32, #tpu.memory_space<vmem>>, %arg5: memref<1x2x128xf32, #tpu.memory_space<vmem>>, %arg6: memref<1x2x128xf32, #tpu.memory_space<vmem>>) attributes {dimension_semantics = [#tpu.dimension_semantics<parallel>, #tpu.dimension_semantics<arbitrary>], iteration_bounds = array<i64: 1, 1>, scalar_prefetch = 0 : i64, scratch_operands = 0 : i64, tpu.core_type = #tpu.core_type<tc>, window_params = [{transform_indices = @transform_0, window_bounds = array<i64: 2, 8, 128>}, {transform_indices = @transform_1, window_bounds = array<i64: 2, 8, 128>}, {transform_indices = @transform_2, window_bounds = array<i64: 1, 2, 128>}, {transform_indices = @transform_3, window_bounds = array<i64: 1, 2, 128>}, {transform_indices = @transform_4, window_bounds = array<i64: 1, 2, 128>}]} {
    %c0_i32 = arith.constant 0 : i32
    %0 = arith.cmpi eq, %arg1, %c0_i32 : i32
    %1 = arith.extui %0 : i1 to i32
    %c0_i32_0 = arith.constant 0 : i32
    %2 = arith.cmpi ne, %1, %c0_i32_0 : i32
    scf.if %2 {
      %cst_26 = arith.constant 0.000000e+00 : f32
      %21 = vector.broadcast %cst_26 : f32 to vector<1x2x128xf32>
      %c0_27 = arith.constant 0 : index
      %c0_28 = arith.constant 0 : index
      %c0_29 = arith.constant 0 : index
      %22 = vector.load %arg4[%c0_27, %c0_28, %c0_29] : memref<1x2x128xf32, #tpu.memory_space<vmem>>, vector<1x2x128xf32>
      tpu.vector_store %arg4[%c0_27, %c0_28, %c0_29], %21 {strides = array<i32>} : memref<1x2x128xf32, #tpu.memory_space<vmem>>, vector<1x2x128xf32>,
      %cst_30 = arith.constant 0.000000e+00 : f32
      %23 = vector.broadcast %cst_30 : f32 to vector<1x2x128xf32>
      %c0_31 = arith.constant 0 : index
      %c0_32 = arith.constant 0 : index
      %c0_33 = arith.constant 0 : index
      %24 = vector.load %arg5[%c0_31, %c0_32, %c0_33] : memref<1x2x128xf32, #tpu.memory_space<vmem>>, vector<1x2x128xf32>
      tpu.vector_store %arg5[%c0_31, %c0_32, %c0_33], %23 {strides = array<i32>} : memref<1x2x128xf32, #tpu.memory_space<vmem>>, vector<1x2x128xf32>,
      %cst_34 = arith.constant 0.000000e+00 : f32
      %25 = vector.broadcast %cst_34 : f32 to vector<1x2x128xf32>
      %c0_35 = arith.constant 0 : index
      %c0_36 = arith.constant 0 : index
      %c0_37 = arith.constant 0 : index
      %26 = vector.load %arg6[%c0_35, %c0_36, %c0_37] : memref<1x2x128xf32, #tpu.memory_space<vmem>>, vector<1x2x128xf32>
      tpu.vector_store %arg6[%c0_35, %c0_36, %c0_37], %25 {strides = array<i32>} : memref<1x2x128xf32, #tpu.memory_space<vmem>>, vector<1x2x128xf32>,
    } else {
    }
    %c0 = arith.constant 0 : index
    %c0_1 = arith.constant 0 : index
    %c0_2 = arith.constant 0 : index
    %3 = vector.load %arg2[%c0, %c0_1, %c0_2] : memref<2x8x128xf32, #tpu.memory_space<vmem>>, vector<2x8x128xf32>
    %c0_3 = arith.constant 0 : index
    %c0_4 = arith.constant 0 : index
    %c0_5 = arith.constant 0 : index
    %4 = vector.load %arg3[%c0_3, %c0_4, %c0_5] : memref<2x8x128xf32, #tpu.memory_space<vmem>>, vector<2x8x128xf32>
    %c0_6 = arith.constant 0 : index
    %c0_7 = arith.constant 0 : index
    %c0_8 = arith.constant 0 : index
    %5 = vector.load %arg4[%c0_6, %c0_7, %c0_8] : memref<1x2x128xf32, #tpu.memory_space<vmem>>, vector<1x2x128xf32>
    %6 = arith.mulf %3, %4 : vector<2x8x128xf32>
    %cst = arith.constant dense<0.000000e+00> : vector<2x128xf32>
    %7 = vector.multi_reduction <add>, %6, %cst [1] : vector<2x8x128xf32> to vector<2x128xf32>
    %8 = vector.shape_cast %7 : vector<2x128xf32> to vector<1x2x128xf32>
    %9 = arith.addf %5, %8 : vector<1x2x128xf32>
    %c0_9 = arith.constant 0 : index
    %c0_10 = arith.constant 0 : index
    %c0_11 = arith.constant 0 : index
    %10 = vector.load %arg4[%c0_9, %c0_10, %c0_11] : memref<1x2x128xf32, #tpu.memory_space<vmem>>, vector<1x2x128xf32>
    tpu.vector_store %arg4[%c0_9, %c0_10, %c0_11], %9 {strides = array<i32>} : memref<1x2x128xf32, #tpu.memory_space<vmem>>, vector<1x2x128xf32>,
    %c0_12 = arith.constant 0 : index
    %c0_13 = arith.constant 0 : index
    %c0_14 = arith.constant 0 : index
    %11 = vector.load %arg5[%c0_12, %c0_13, %c0_14] : memref<1x2x128xf32, #tpu.memory_space<vmem>>, vector<1x2x128xf32>
    %cst_15 = arith.constant dense<0.000000e+00> : vector<2x128xf32>
    %12 = vector.multi_reduction <add>, %3, %cst_15 [1] : vector<2x8x128xf32> to vector<2x128xf32>
    %13 = vector.shape_cast %12 : vector<2x128xf32> to vector<1x2x128xf32>
    %14 = arith.addf %11, %13 : vector<1x2x128xf32>
    %c0_16 = arith.constant 0 : index
    %c0_17 = arith.constant 0 : index
    %c0_18 = arith.constant 0 : index
    %15 = vector.load %arg5[%c0_16, %c0_17, %c0_18] : memref<1x2x128xf32, #tpu.memory_space<vmem>>, vector<1x2x128xf32>
    tpu.vector_store %arg5[%c0_16, %c0_17, %c0_18], %14 {strides = array<i32>} : memref<1x2x128xf32, #tpu.memory_space<vmem>>, vector<1x2x128xf32>,
    %c0_19 = arith.constant 0 : index
    %c0_20 = arith.constant 0 : index
    %c0_21 = arith.constant 0 : index
    %16 = vector.load %arg6[%c0_19, %c0_20, %c0_21] : memref<1x2x128xf32, #tpu.memory_space<vmem>>, vector<1x2x128xf32>
    %cst_22 = arith.constant dense<0.000000e+00> : vector<2x128xf32>
    %17 = vector.multi_reduction <add>, %4, %cst_22 [1] : vector<2x8x128xf32> to vector<2x128xf32>
    %18 = vector.shape_cast %17 : vector<2x128xf32> to vector<1x2x128xf32>
    %19 = arith.addf %16, %18 : vector<1x2x128xf32>
    %c0_23 = arith.constant 0 : index
    %c0_24 = arith.constant 0 : index
    %c0_25 = arith.constant 0 : index
    %20 = vector.load %arg6[%c0_23, %c0_24, %c0_25] : memref<1x2x128xf32, #tpu.memory_space<vmem>>, vector<1x2x128xf32>
    tpu.vector_store %arg6[%c0_23, %c0_24, %c0_25], %19 {strides = array<i32>} : memref<1x2x128xf32, #tpu.memory_space<vmem>>, vector<1x2x128xf32>,
    return
  }
  func.func @transform_0(%arg0: i32, %arg1: i32) -> (i32, i32, i32) {
    %c1_i32 = arith.constant 1 : i32
    %0 = arith.muli %arg0, %c1_i32 : i32
    %1 = arith.addi %0, %arg1 : i32
    %c0_i32 = arith.constant 0 : i32
    %2 = arith.minsi %1, %c0_i32 : i32
    %c0_i32_0 = arith.constant 0 : i32
    %c0_i32_1 = arith.constant 0 : i32
    %c0_i32_2 = arith.constant 0 : i32
    return %c0_i32_0, %2, %c0_i32_1 : i32, i32, i32
  }
  func.func @transform_1(%arg0: i32, %arg1: i32) -> (i32, i32, i32) {
    %c1_i32 = arith.constant 1 : i32
    %0 = arith.muli %arg0, %c1_i32 : i32
    %1 = arith.addi %0, %arg1 : i32
    %c0_i32 = arith.constant 0 : i32
    %2 = arith.minsi %1, %c0_i32 : i32
    %c0_i32_0 = arith.constant 0 : i32
    %c0_i32_1 = arith.constant 0 : i32
    %c0_i32_2 = arith.constant 0 : i32
    return %c0_i32_0, %2, %c0_i32_1 : i32, i32, i32
  }
  func.func @transform_2(%arg0: i32, %arg1: i32) -> (i32, i32, i32) {
    %c0_i32 = arith.constant 0 : i32
    %c0_i32_0 = arith.constant 0 : i32
    %c0_i32_1 = arith.constant 0 : i32
    return %arg0, %c0_i32, %c0_i32_0 : i32, i32, i32
  }
  func.func @transform_3(%arg0: i32, %arg1: i32) -> (i32, i32, i32) {
    %c0_i32 = arith.constant 0 : i32
    %c0_i32_0 = arith.constant 0 : i32
    %c0_i32_1 = arith.constant 0 : i32
    return %arg0, %c0_i32, %c0_i32_0 : i32, i32, i32
  }
  func.func @transform_4(%arg0: i32, %arg1: i32) -> (i32, i32, i32) {
    %c0_i32 = arith.constant 0 : i32
    %c0_i32_0 = arith.constant 0 : i32
    %c0_i32_1 = arith.constant 0 : i32
    return %arg0, %c0_i32, %c0_i32_0 : i32, i32, i32
  }
}

</mosaic_0001>

<bundles_post_ra>
// kernel: tpu_custom_call.1
= control target key start
LH: loop header
LB: loop body
LE: loop exit
PB: predicated region body
PF: predicated region fallthrough
CT: control target
= control target key end

     0   :  { %10 = vsyncpa [#allocation3], 0  ;;  %s414_s0 = inlined_call_operand.hbm [shape: f32[2,8,128], index: 0, kind: input, shape index: {}]   ;;  %s415_s1 = inlined_call_operand.hbm [shape: f32[2,8,128], index: 1, kind: input, shape index: {}]   ;;  %s416_s2 = inlined_call_operand.hbm [shape: f32[1,2,128], index: 2, kind: output, shape index: {0}]   ;;  %s417_s3 = inlined_call_operand.hbm [shape: f32[1,2,128], index: 3, kind: output, shape index: {1}]   ;;  %s418_s4 = inlined_call_operand.hbm [shape: f32[1,2,128], index: 4, kind: output, shape index: {2}]  }
   0x1   :  { %11 = vsyncpa [#allocation6], 0 }
   0x2   :  { %12 = vsyncpa [#allocation4], 0 }
   0x3   :  { %13 = vsyncpa [#allocation9], 0  ;;  %s304_s15 = smov [#allocation2]   ;;  %s186_s19 = scalar_lea.hbm %s414_s0, 256 }
   0x4   :  { %s24_s16 = sshll.u32 %s304_s15, 4  ;;  %p187_p0 = scmp.ne.s32.totalorder %s414_s0, %s186_s19  ;;  %s25_s16 = int_to_ptr.vmem [resolvable:$true] %s24_s16 }
   0x5   :  { %p190_p1 = scmp.lt.u32.totalorder %s186_s19, %s414_s0 }
   0x7   :  { %p192_p2 = pnand %p190_p1, %p187_p0 }
   0x9   :  { %195 = shalt.err (!%p192_p2)
}
   0xa   :  { %s196_s24 = scalar_lea.vmem %s25_s16, 256  ;;  %p201_p4 = scmp.lt.s32.totalorder %s25_s16, %s25_s16 }
   0xb   :  { %p197_p3 = scmp.ne.s32.totalorder %s25_s16, %s196_s24  ;;  %p202_p5 = scmp.lt.s32.totalorder %s196_s24, %s196_s24 }
   0xd   :  { %p203_p6 = por %p202_p5, %p201_p4 }
   0xf   :  { %p204_p7 = pnand %p203_p6, %p197_p3 }
  0x11   :  { %207 = shalt.err (!%p204_p7)
}
  0x12   :  { %s305_s25 = smov 128   ;;  %s306_s26 = smov 8  }
  0x13   :  { %30 = dma.hbm_to_vmem [thread:$0]  %s414_s0, 256, %s25_s16, [#allocation3], %s305_s25, %s305_s25, %s306_s26  }
  0x14   :  { %s307_s29 = smov [#allocation5]   ;;  %s208_s7 = scalar_lea.hbm %s415_s1, 256 }
  0x15   :  { %s41_s30 = sshll.u32 %s307_s29, 4  ;;  %p209_p8 = scmp.ne.s32.totalorder %s415_s1, %s208_s7  ;;  %s42_s30 = int_to_ptr.vmem [resolvable:$true] %s41_s30 }
  0x16   :  { %p212_p9 = scmp.lt.u32.totalorder %s208_s7, %s415_s1 }
  0x18   :  { %p214_p10 = pnand %p212_p9, %p209_p8 }
  0x1a   :  { %217 = shalt.err (!%p214_p10)
}
  0x1b   :  { %s218_s12 = scalar_lea.vmem %s42_s30, 256  ;;  %p223_p12 = scmp.lt.s32.totalorder %s42_s30, %s42_s30 }
  0x1c   :  { %p219_p11 = scmp.ne.s32.totalorder %s42_s30, %s218_s12  ;;  %p224_p13 = scmp.lt.s32.totalorder %s218_s12, %s218_s12 }
  0x1e   :  { %p225_p0 = por %p224_p13, %p223_p12 }
  0x20   :  { %p226_p1 = pnand %p225_p0, %p219_p11 }
  0x22   :  { %229 = shalt.err (!%p226_p1)
}
  0x23   :  { %47 = dma.hbm_to_vmem [thread:$0]  %s415_s1, 256, %s42_s30, [#allocation6], %s305_s25, %s305_s25, %s306_s26  }
  0x24   :  { %296 = dma.done.wait [#allocation3], 256  }
  0x25   :  { %297 = vsyncadd [#allocation3], 4294967040 }
  0x26   :  { %298 = dma.done.wait [#allocation6], 256  }
  0x27   :  { %299 = vsyncadd [#allocation6], 4294967040  ;;  %v308_v0 = vmov 0.0   ;;  %v67_v1 = vld [vmem:[#allocation2] sm:$0xff]  ;;  %v68_v2 = vld [vmem:[#allocation2 + $0x8] sm:$0xff]  ;;  %vm88_vm0 = vcmask 1041409  }
  0x28   :  { %65 = vst [vmem:[#allocation8] sm:$0x3] %v308_v0  ;;  %64 = vst [vmem:[#allocation7] sm:$0x3] %v308_v0  ;;  %v69_v3 = vld [vmem:[#allocation5] sm:$0xff]  ;;  %v94_v4 = vrot.slane %v67_v1, 4 }
  0x29   :  { %66 = vst [vmem:[#allocation10] sm:$0x3] %v308_v0  ;;  %v100_v5 = vrot.slane %v68_v2, 4  ;;  %v70_v6 = vld [vmem:[#allocation5 + $0x8] sm:$0xff]  ;;  %v72_v7 = vmul.f32 %v69_v3, %v67_v1  ;;  %v113_v8 = vrot.slane %v69_v3, 4  ;;  %s309_s1 = smov [#allocation8]  }
  0x2a   :  { %v73_v9 = vmul.f32 %v70_v6, %v68_v2  ;;  %v119_v10 = vrot.slane %v70_v6, 4  ;;  %v95_v11 = vadd.f32 %v94_v4, %v67_v1  ;;  %s147_s14 = sshll.u32 %s309_s1, 4  ;;  %s310_s15 = smov [#allocation10]   ;;  %s148_s14 = int_to_ptr.vmem [resolvable:$true] %s147_s14 }
  0x2b   :  { %v101_v12 = vadd.f32 %v100_v5, %v68_v2  ;;  %v74_v13 = vrot.slane %v72_v7, 4  ;;  %v114_v14 = vadd.f32 %v113_v8, %v69_v3  ;;  %s157_s16 = sshll.u32 %s310_s15, 4  ;;  %s311_s17 = smov [#allocation7]   ;;  %s363_s16 = int_to_ptr.vmem [resolvable:$true] %s157_s16 }
  0x2c   :  { %v80_v15 = vrot.slane %v73_v9, 4  ;;  %v120_v16 = vadd.f32 %v119_v10, %v70_v6  ;;  %v96_v17 = vrot.slane %v95_v11, 2  ;;  %s137_s18 = sshll.u32 %s311_s17, 4  ;;  %s230_s19 = scalar_lea.vmem %s148_s14, 32  ;;  %s366_s18 = int_to_ptr.vmem [resolvable:$true] %s137_s18 }
  0x2d   :  { %v102_v18 = vrot.slane %v101_v12, 2  ;;  %v75_v19 = vadd.f32 %v74_v13, %v72_v7  ;;  %v115_v20 = vrot.slane %v114_v14, 2  ;;  %p231_p2 = scmp.ne.s32.totalorder %s148_s14, %s230_s19  ;;  %p235_p3 = scmp.lt.s32.totalorder %s148_s14, %s148_s14 }
  0x2e   :  { %v81_v21 = vadd.f32 %v80_v15, %v73_v9  ;;  %v121_v22 = vrot.slane %v120_v16, 2  ;;  %v97_v23 = vadd.f32 %v96_v17, %v95_v11  ;;  %p236_p4 = scmp.lt.s32.totalorder %s230_s19, %s230_s19 }
  0x2f   :  { %v103_v24 = vadd.f32 %v102_v18, %v101_v12  ;;  %v76_v25 = vrot.slane %v75_v19, 2  ;;  %v116_v26 = vadd.f32 %v115_v20, %v114_v14  ;;  %v93_v35 = vld [vmem:[#allocation8] sm:$0x3]  ;;  %v71_v46 = vld [vmem:[#allocation7] sm:$0x3] }
  0x30   :  { %v82_v27 = vrot.slane %v81_v21, 2  ;;  %v122_v28 = vadd.f32 %v121_v22, %v120_v16  ;;  %v98_v29 = vrot.slane %v97_v23, 1  ;;  %v112_v41 = vld [vmem:[#allocation10] sm:$0x3]  ;;  %p237_p5 = por %p236_p4, %p235_p3 }
  0x31   :  { %v104_v30 = vrot.slane %v103_v24, 1  ;;  %v77_v31 = vadd.f32 %v76_v25, %v75_v19  ;;  %v117_v32 = vrot.slane %v116_v26, 1 }
  0x32   :  { %v83_v33 = vadd.f32 %v82_v27, %v81_v21  ;;  %v123_v34 = vrot.slane %v122_v28, 1  ;;  %v99_v36 = vadd.f32 %v98_v29, %v97_v23  ;;  %p238_p6 = pnand %p237_p5, %p231_p2 }
  0x33   :  { %v105_v37 = vadd.f32 %v104_v30, %v103_v24  ;;  %v78_v38 = vrot.slane %v77_v31, 1  ;;  %v118_v39 = vadd.f32 %v117_v32, %v116_v26 }
  0x34   :  { %v84_v40 = vrot.slane %v83_v33, 1  ;;  %v124_v42 = vadd.f32 %v123_v34, %v122_v28 }
  0x35   :  { %v108_v43 = vsel %vm88_vm0, %v105_v37, %v99_v36  ;;  %v79_v44 = vadd.f32 %v78_v38, %v77_v31 }
  0x36   :  { %v110_v45 = vadd.f32 %v108_v43, %v93_v35  ;;  %v85_v47 = vadd.f32 %v84_v40, %v83_v33  ;;  %v127_v48 = vsel %vm88_vm0, %v124_v42, %v118_v39 }
  0x37   :  { %v129_v49 = vadd.f32 %v127_v48, %v112_v41 }
  0x38   :  { %111 = vst [vmem:[#allocation8] sm:$0x3] %v110_v45  ;;  %v89_v50 = vsel %vm88_vm0, %v85_v47, %v79_v44 }
  0x39   :  { %v91_v51 = vadd.f32 %v89_v50, %v71_v46  ;;  %130 = vst [vmem:[#allocation10] sm:$0x3] %v129_v49 }
  0x3a   :  { %241 = shalt.err (!%p238_p6)
}
  0x3b   :  { %s242_s22 = scalar_lea.hbm %s417_s3, 32 }
  0x3c   :  { %p243_p7 = scmp.ne.s32.totalorder %s417_s3, %s242_s22  ;;  %p246_p8 = scmp.lt.u32.totalorder %s242_s22, %s417_s3 }
  0x3e   :  { %p248_p9 = pnand %p246_p8, %p243_p7 }
  0x40   :  { %251 = shalt.err (!%p248_p9)
}
  0x41   :  { %150 = dma.vmem_to_hbm [thread:$0]  %s148_s14, 32, %s417_s3, [#allocation9]  }
  0x42   :  { %s252_s29 = scalar_lea.vmem %s363_s16, 32  ;;  %p257_p11 = scmp.lt.s32.totalorder %s363_s16, %s363_s16 }
  0x43   :  { %p253_p10 = scmp.ne.s32.totalorder %s363_s16, %s252_s29  ;;  %p258_p12 = scmp.lt.s32.totalorder %s252_s29, %s252_s29 }
  0x45   :  { %p259_p13 = por %p258_p12, %p257_p11 }
  0x47   :  { %p260_p0 = pnand %p259_p13, %p253_p10 }
  0x49   :  { %263 = shalt.err (!%p260_p0)
}
  0x4a   :  { %s264_s6 = scalar_lea.hbm %s418_s4, 32 }
  0x4b   :  { %p265_p1 = scmp.ne.s32.totalorder %s418_s4, %s264_s6  ;;  %p268_p2 = scmp.lt.u32.totalorder %s264_s6, %s418_s4 }
  0x4d   :  { %p270_p3 = pnand %p268_p2, %p265_p1 }
  0x4f   :  { %273 = shalt.err (!%p270_p3)
}
  0x50   :  { %160 = dma.vmem_to_hbm [thread:$0]  %s363_s16, 32, %s418_s4, [#allocation9]   ;;  %92 = vst [vmem:[#allocation7] sm:$0x3] %v91_v51 }
  0x51   :  { %s274_s12 = scalar_lea.vmem %s366_s18, 32  ;;  %p279_p5 = scmp.lt.s32.totalorder %s366_s18, %s366_s18 }
  0x52   :  { %p275_p4 = scmp.ne.s32.totalorder %s366_s18, %s274_s12  ;;  %p280_p6 = scmp.lt.s32.totalorder %s274_s12, %s274_s12 }
  0x54   :  { %p281_p7 = por %p280_p6, %p279_p5 }
  0x56   :  { %p282_p8 = pnand %p281_p7, %p275_p4 }
  0x58   :  { %285 = shalt.err (!%p282_p8)
}
  0x59   :  { %s286_s1 = scalar_lea.hbm %s416_s2, 32 }
  0x5a   :  { %p287_p9 = scmp.ne.s32.totalorder %s416_s2, %s286_s1  ;;  %p290_p10 = scmp.lt.u32.totalorder %s286_s1, %s416_s2 }
  0x5c   :  { %p292_p11 = pnand %p290_p10, %p287_p9 }
  0x5e   :  { %295 = shalt.err (!%p292_p11)
}
  0x5f   :  { %140 = dma.vmem_to_hbm [thread:$0]  %s366_s18, 32, %s416_s2, [#allocation4]  }
  0x60   :  { %300 = dma.done.wait [#allocation4], 32  }
  0x61   :  { %301 = vsyncadd [#allocation4], 4294967264 }
  0x62   :  { %302 = dma.done.wait [#allocation9], 64  }
  0x63   :  { %303 = vsyncadd [#allocation9], 4294967232 }
  0x64   :  { %170 = vsyncpa [#allocation3], 1 }
  0x65   :  { %171 = vsyncpa [#allocation6], 1 }
  0x66   :  { %172 = vsyncpa [#allocation4], 1 }
  0x67   :  { %173 = vsyncpa [#allocation9], 1 }

</bundles_post_ra>
